<compile_context>
chip_gen: v6e
topology: v6e:2x2x1
jax: 0.10.0
libtpu: 0.0.40
codegen_flags: <defaults>
</compile_context>

<pallas_src>
import jax
import jax.numpy as jnp
from jax.experimental import pallas as pl
from jax.experimental.pallas import tpu as pltpu

_LANE = 128  # vreg lane width


def _round_up(a, b):
    return (a + b - 1) // b * b


def _sublane(itemsize):
    # f32 -> 8, bf16/f16 -> 16, int8/fp8 -> 32
    return {4: 8, 2: 16, 1: 32}.get(int(itemsize), 8)


def _classifier_kernel(x_ref, w1_ref, b1_ref, w2_ref, b2_ref, o_ref):
    # dense1 (+ folded eval-mode BatchNorm): bf16 x bf16 MXU matmul, f32 accumulation.
    x = x_ref[...].astype(w1_ref.dtype)
    h = jnp.dot(x, w1_ref[...], preferred_element_type=jnp.float32) + b1_ref[...]

    # ReLU on the f32 accumulator (VPU; v5e has no bf16 VPU).
    h = jnp.maximum(h, 0.0)

    # Dropout(p=0.1) -> identity in eval mode.

    # dense2: second bf16 MXU matmul, stored straight to the n_class-wide output
    # (masked vst; cheaper than a 128-lane-padded f32 writeback + post-kernel slice
    #  when n_class is small).
    o_ref[...] = (jnp.dot(h.astype(w2_ref.dtype), w2_ref[...],
                          preferred_element_type=jnp.float32)
                  + b2_ref[...]).astype(o_ref.dtype)


def prepare_nonlin_classifier(params, *, eps=1e-5, compute_dtype=jnp.bfloat16):
    """Fold eval-mode BatchNorm into dense1 and lay the weights out for the kernel.

    Call once per set of weights and reuse across forward calls (hoists the
    fold/transpose/lane-pad/cast HBM pass out of the per-batch path).
    """
    w1, b1 = params["w1"], params["b1"]            # (d_hidd, d_in), (d_hidd,)
    w2, b2 = params["w2"], params["b2"]            # (n_class, d_hidd), (n_class,)
    gamma, beta = params["gamma"], params["beta"]
    rmean, rvar = params["running_mean"], params["running_var"]
    d_hidd, d_in = w1.shape
    n_class = w2.shape[0]

    # Eval-mode BN fold (numerically identical to running-stat BN after dense1).
    scale = gamma.astype(jnp.float32) * jax.lax.rsqrt(rvar.astype(jnp.float32) + eps)
    w1f = w1.astype(jnp.float32) * scale[:, None]
    b1f = (b1.astype(jnp.float32) - rmean.astype(jnp.float32)) * scale + beta.astype(jnp.float32)

    DH = _round_up(d_hidd, _LANE)  # lane-pad the hidden dim: h, bias add, ReLU, 2nd matmul lane-dense
    w1t = jnp.zeros((d_in, DH), compute_dtype).at[:, :d_hidd].set(w1f.T.astype(compute_dtype))
    b1r = jnp.zeros((1, DH), jnp.float32).at[0, :d_hidd].set(b1f)
    w2t = jnp.zeros((DH, n_class), compute_dtype).at[:d_hidd, :].set(w2.T.astype(compute_dtype))
    b2r = b2.astype(jnp.float32).reshape(1, n_class)

    return {"w1t": w1t, "b1r": b1r, "w2t": w2t, "b2r": b2r,
            "d_in": d_in, "d_hidd": d_hidd, "n_class": n_class, "DH": DH}


def nonlin_classifier(x, prepared, *, max_tile_n=1024, vmem_budget_bytes=8 << 20):
    """x: (N, d_in) f32 or bf16. prepared: output of prepare_nonlin_classifier.
    Returns (N, n_class) f32."""
    N, d_in = x.shape
    assert d_in == prepared["d_in"], "x feature dim does not match the prepared weights"
    n_class, DH = prepared["n_class"], prepared["DH"]
    w1t, b1r, w2t, b2r = prepared["w1t"], prepared["b1r"], prepared["w2t"], prepared["b2r"]

    x_bytes = jnp.dtype(x.dtype).itemsize
    # x tile and f32 output tile both live in VMEM -> honor both sublane constraints.
    sub = max(_sublane(x_bytes), _sublane(4))

    # VMEM accounting (conservative: Pallas double-buffers even constant-index blocks).
    w_bytes = 2 * (w1t.size * w1t.dtype.itemsize + b1r.size * 4
                   + w2t.size * w2t.dtype.itemsize + b2r.size * 4)
    budget = max(1 << 20, vmem_budget_bytes - w_bytes)
    per_row = 2 * d_in * x_bytes + 2 * n_class * 4      # double-buffered x in + f32 out, per row
    fit = max(sub, (budget // per_row) // sub * sub)

    # Big tiles amortize the ~0.35 us/step overhead, but keep >= 4 grid steps when the
    # batch allows so each v7x TensorCore gets >= 2 iterations (DMA/compute overlap).
    tile_n = max(sub, min(max_tile_n, fit,
                          _round_up(pl.cdiv(N, 4), sub),
                          _round_up(N, sub)))
    grid = (pl.cdiv(N, tile_n),)   # ragged last block is masked by Pallas (no jnp.pad HBM pass)

    # Constant block index -> Pallas keeps these resident (DMA'd once, not per step).
    resident = lambda shape: pl.BlockSpec(shape, lambda i: (0, 0))

    cost = pl.CostEstimate(
        flops=2 * N * (d_in * DH + DH * n_class),
        transcendentals=0,
        bytes_accessed=(N * d_in * x_bytes + N * n_class * 4
                        + w1t.size * w1t.dtype.itemsize + b1r.size * 4
                        + w2t.size * w2t.dtype.itemsize + b2r.size * 4),
    )

    return pl.pallas_call(
        _classifier_kernel,
        out_shape=jax.ShapeDtypeStruct((N, n_class), jnp.float32),
        grid_spec=pltpu.PrefetchScalarGridSpec(
            num_scalar_prefetch=0,
            grid=grid,
            in_specs=[
                pl.BlockSpec((tile_n, d_in), lambda i: (i, 0)),   # x tile
                resident((d_in, DH)),                             # folded W1^T (lane-padded, bf16)
                resident((1, DH)),                                # folded b1 (f32)
                resident((DH, n_class)),                          # W2^T (bf16)
                resident((1, n_class)),                           # b2 (f32)
            ],
            out_specs=pl.BlockSpec((tile_n, n_class), lambda i: (i, 0)),
        ),
        compiler_params=pltpu.CompilerParams(
            dimension_semantics=("parallel",)),
        cost_estimate=cost,
    )(x, w1t, b1r, w2t, b2r)


# --------------------------------------------------------------------------------------
# References and test harness
# --------------------------------------------------------------------------------------

def _reference(x, params, eps=1e-5):
    """Plain-JAX f32 reference for the eval-mode forward (running-stat BN, dropout identity)."""
    h = x @ params["w1"].T + params["b1"]
    h = ((h - params["running_mean"])
         * jax.lax.rsqrt(params["running_var"] + eps)
         * params["gamma"] + params["beta"])
    h = jnp.maximum(h, 0.0)
    return h @ params["w2"].T + params["b2"]


def _reference_prepared(x, prepared):
    """Mirrors the kernel's compute path exactly (BN fold + bf16 MXU operands, f32 accumulation)."""
    xb = x.astype(prepared["w1t"].dtype)
    h = jnp.dot(xb, prepared["w1t"], preferred_element_type=jnp.float32) + prepared["b1r"]
    h = jnp.maximum(h, 0.0)
    return (jnp.dot(h.astype(prepared["w2t"].dtype), prepared["w2t"],
                    preferred_element_type=jnp.float32) + prepared["b2r"])


def _init_params(key, d_in, d_hidd, n_class):
    """Deterministic init mirroring nn.Linear (uniform +-1/sqrt(fan_in)) and BN defaults."""
    k1, k2, k3, k4 = jax.random.split(key, 4)
    lim1 = 1.0 / jnp.sqrt(d_in)
    lim2 = 1.0 / jnp.sqrt(d_hidd)
    return {
        "w1": jax.random.uniform(k1, (d_hidd, d_in), jnp.float32, -lim1, lim1),
        "b1": jax.random.uniform(k2, (d_hidd,), jnp.float32, -lim1, lim1),
        "w2": jax.random.uniform(k3, (n_class, d_hidd), jnp.float32, -lim2, lim2),
        "b2": jax.random.uniform(k4, (n_class,), jnp.float32, -lim2, lim2),
        "gamma": jnp.ones((d_hidd,), jnp.float32),
        "beta": jnp.zeros((d_hidd,), jnp.float32),
        "running_mean": jnp.zeros((d_hidd,), jnp.float32),
        "running_var": jnp.ones((d_hidd,), jnp.float32),
    }


if __name__ == "__main__":
    N, d_in, d_hidd, n_class = 16, 32, 16, 8
    key = jax.random.PRNGKey(0)
    kx, kp = jax.random.split(key)
    x = jax.random.normal(kx, (N, d_in), jnp.float32)
    params = _init_params(kp, d_in, d_hidd, n_class)

    # Weight prep is hoisted: done once, reused for every forward call.
    prepared = prepare_nonlin_classifier(params)

    out = jax.block_until_ready(nonlin_classifier(x, prepared))

    ref_path = _reference_prepared(x, prepared)   # same bf16-MXU math as the kernel
    ref_f32 = _reference(x, params)               # exact f32 eval-mode module semantics

    assert out.shape == (N, n_class)
    assert jnp.allclose(out, ref_path, atol=1e-3, rtol=1e-3), "mismatch vs bf16-path reference"
    assert jnp.allclose(out, ref_f32, atol=5e-2, rtol=5e-2), "mismatch vs f32 eval-mode reference"
    print("KERNEL_OK")
</pallas_src>

<mosaic_0001>
module attributes {stable_mosaic.version = 11 : i64} {
  func.func @_classifier_kernel(%arg0: i32, %arg1: memref<8x32xf32, #tpu.memory_space<vmem>>, %arg2: memref<32x128xbf16, #tpu.memory_space<vmem>>, %arg3: memref<1x128xf32, #tpu.memory_space<vmem>>, %arg4: memref<128x8xbf16, #tpu.memory_space<vmem>>, %arg5: memref<1x8xf32, #tpu.memory_space<vmem>>, %arg6: memref<8x8xf32, #tpu.memory_space<vmem>>) attributes {dimension_semantics = [#tpu.dimension_semantics<parallel>], iteration_bounds = array<i64: 2>, scalar_prefetch = 0 : i64, scratch_operands = 0 : i64, tpu.core_type = #tpu.core_type<tc>, window_params = [{transform_indices = @transform_0, window_bounds = array<i64: 8, 32>}, {pipeline_mode = #tpu.pipeline_mode<synchronous>, transform_indices = @transform_1, window_bounds = array<i64: 32, 128>}, {pipeline_mode = #tpu.pipeline_mode<synchronous>, transform_indices = @transform_2, window_bounds = array<i64: 1, 128>}, {pipeline_mode = #tpu.pipeline_mode<synchronous>, transform_indices = @transform_3, window_bounds = array<i64: 128, 8>}, {pipeline_mode = #tpu.pipeline_mode<synchronous>, transform_indices = @transform_4, window_bounds = array<i64: 1, 8>}, {transform_indices = @transform_5, window_bounds = array<i64: 8, 8>}]} {
    %c0 = arith.constant 0 : index
    %c0_0 = arith.constant 0 : index
    %0 = vector.load %arg1[%c0, %c0_0] : memref<8x32xf32, #tpu.memory_space<vmem>>, vector<8x32xf32>
    %1 = arith.truncf %0 : vector<8x32xf32> to vector<8x32xbf16>
    %c0_1 = arith.constant 0 : index
    %c0_2 = arith.constant 0 : index
    %2 = vector.load %arg2[%c0_1, %c0_2] : memref<32x128xbf16, #tpu.memory_space<vmem>>, vector<32x128xbf16>
    %cst = arith.constant dense<0.000000e+00> : vector<8x128xf32>
    %3 = tpu.matmul %1, %2, %cst {dimension_numbers = #tpu.dot_dimension_numbers<[1], [0], [0], [1], [0, 0, 1, 1], [], []>} : vector<8x32xbf16>, vector<32x128xbf16>, vector<8x128xf32> -> vector<8x128xf32>
    %c0_3 = arith.constant 0 : index
    %c0_4 = arith.constant 0 : index
    %4 = vector.load %arg3[%c0_3, %c0_4] : memref<1x128xf32, #tpu.memory_space<vmem>>, vector<1x128xf32>
    %5 = vector.broadcast %4 : vector<1x128xf32> to vector<8x128xf32>
    %6 = arith.addf %3, %5 : vector<8x128xf32>
    %cst_5 = arith.constant 0.000000e+00 : f32
    %7 = vector.broadcast %cst_5 : f32 to vector<8x128xf32>
    %8 = arith.maximumf %6, %7 : vector<8x128xf32>
    %9 = arith.truncf %8 : vector<8x128xf32> to vector<8x128xbf16>
    %c0_6 = arith.constant 0 : index
    %c0_7 = arith.constant 0 : index
    %10 = vector.load %arg4[%c0_6, %c0_7] : memref<128x8xbf16, #tpu.memory_space<vmem>>, vector<128x8xbf16>
    %cst_8 = arith.constant dense<0.000000e+00> : vector<8x8xf32>
    %11 = tpu.matmul %9, %10, %cst_8 {dimension_numbers = #tpu.dot_dimension_numbers<[1], [0], [0], [1], [0, 0, 1, 1], [], []>} : vector<8x128xbf16>, vector<128x8xbf16>, vector<8x8xf32> -> vector<8x8xf32>
    %c0_9 = arith.constant 0 : index
    %c0_10 = arith.constant 0 : index
    %12 = vector.load %arg5[%c0_9, %c0_10] : memref<1x8xf32, #tpu.memory_space<vmem>>, vector<1x8xf32>
    %13 = vector.broadcast %12 : vector<1x8xf32> to vector<8x8xf32>
    %14 = arith.addf %11, %13 : vector<8x8xf32>
    %c0_11 = arith.constant 0 : index
    %c0_12 = arith.constant 0 : index
    %15 = vector.load %arg6[%c0_11, %c0_12] : memref<8x8xf32, #tpu.memory_space<vmem>>, vector<8x8xf32>
    tpu.vector_store %arg6[%c0_11, %c0_12], %14 {strides = array<i32>} : memref<8x8xf32, #tpu.memory_space<vmem>>, vector<8x8xf32>,
    return
  }
  func.func @transform_0(%arg0: i32) -> (i32, i32) {
    %c0_i32 = arith.constant 0 : i32
    %c0_i32_0 = arith.constant 0 : i32
    return %arg0, %c0_i32 : i32, i32
  }
  func.func @transform_1(%arg0: i32) -> (i32, i32) {
    %c0_i32 = arith.constant 0 : i32
    %c0_i32_0 = arith.constant 0 : i32
    %c0_i32_1 = arith.constant 0 : i32
    return %c0_i32, %c0_i32_0 : i32, i32
  }
  func.func @transform_2(%arg0: i32) -> (i32, i32) {
    %c0_i32 = arith.constant 0 : i32
    %c0_i32_0 = arith.constant 0 : i32
    %c0_i32_1 = arith.constant 0 : i32
    return %c0_i32, %c0_i32_0 : i32, i32
  }
  func.func @transform_3(%arg0: i32) -> (i32, i32) {
    %c0_i32 = arith.constant 0 : i32
    %c0_i32_0 = arith.constant 0 : i32
    %c0_i32_1 = arith.constant 0 : i32
    return %c0_i32, %c0_i32_0 : i32, i32
  }
  func.func @transform_4(%arg0: i32) -> (i32, i32) {
    %c0_i32 = arith.constant 0 : i32
    %c0_i32_0 = arith.constant 0 : i32
    %c0_i32_1 = arith.constant 0 : i32
    return %c0_i32, %c0_i32_0 : i32, i32
  }
  func.func @transform_5(%arg0: i32) -> (i32, i32) {
    %c0_i32 = arith.constant 0 : i32
    %c0_i32_0 = arith.constant 0 : i32
    return %arg0, %c0_i32 : i32, i32
  }
}

</mosaic_0001>

<bundles_post_ra>
// kernel: tpu_custom_call.1
= control target key start
LH: loop header
LB: loop body
LE: loop exit
PB: predicated region body
PF: predicated region fallthrough
CT: control target
= control target key end

     0   :  { %s580_s18 = smov 0   ;;  %s640_s0 = inlined_call_operand.vmem [shape: f32[16,32], index: 0, kind: input, shape index: {}]   ;;  %s641_s1 = inlined_call_operand.vmem [shape: bf16[32,128], index: 1, kind: input, shape index: {}]   ;;  %s642_s2 = inlined_call_operand.vmem [shape: f32[1,128], index: 2, kind: input, shape index: {}]   ;;  %s643_s3 = inlined_call_operand.vmem [shape: bf16[128,8], index: 3, kind: input, shape index: {}]   ;;  %s644_s4 = inlined_call_operand.vmem [shape: f32[1,8], index: 4, kind: input, shape index: {}]   ;;  %s645_s5 = inlined_call_operand.vmem [shape: f32[16,8], index: 5, kind: output, shape index: {}]  }
   0x1 LB: > { %s458_s19 = sadd.s32 4294967295, %s546_s18   ;;  %p462_p0 = scmp.ge.s32.totalorder %s546_s18, 1  ;;  %s546_s18 = sphi %s580_s18, %s15_s18  }
   0x2   : > { %p186_p1 = scmp.lt.s32.totalorder %s546_s18, 3 }
   0x4   : > { %p187_p2 = pnand %p462_p0, %p186_p1 }
   0x5   : > { %p212_p3 = scmp.lt.s32.totalorder (!%p187_p2), %s458_s19, 1 }
   0x6   : > { %190 = sbr.rel (%p187_p2) target bundleno = 418 (0x1a2), region = 40 }
   0xb   : > { %v530_v0 = vld [vmem:[%s641_s1 + $0x8] sm:$0xff]   ;;  %v548_v1 = vmov 0.0   ;;  %v531_v2 = vld [vmem:[%s641_s1] sm:$0xff]   ;;  %vm549_vm0 = vmmov 0   ;;  %v532_v3 = vld [vmem:[%s643_s3 + $0x38] sm:$0xff]   ;;  %s647_s19 = smov (!%p212_p3, %s458_s19), 1 }
   0xc   : > { %492 = vmatprep.subr.bf16.mxu0 %v548_v1  ;;  %500 = vmatprep.subr.bf16.mxu1 %v548_v1  ;;  %v533_v4 = vld [vmem:[%s643_s3 + $0x30] sm:$0xff]   ;;  %s463_s28 = sshll.u32 %s647_s19, 3  ;;  %vm246_vm1 = vcmask 261120   ;;  %v534_v6 = vld [vmem:[%s643_s3 + $0x28] sm:$0xff]   ;;  %v535_v8 = vld [vmem:[%s643_s3 + $0x20] sm:$0xff]   ;;  %vm403_vm2 = vcmask 64512  }
   0xd   : > { %493 = vmatpush3.bf16.msra.mxu0 %v530_v0  ;;  %496 = vmatprep.mubr.msk.bf16.mxu0 %vm549_vm0, %v548_v1  ;;  %s215_s6 = scalar_lea.vmem %s640_s0, %s463_s28  ;;  %v536_v9 = vld [vmem:[%s643_s3 + $0x18] sm:$0xff]   ;;  %v537_v10 = vld [vmem:[%s643_s3 + $0x10] sm:$0xff]   ;;  %v538_v11 = vld [vmem:[%s643_s3 + $0x8] sm:$0xff]   ;;  %s219_s27 = scalar_lea.vmem %s645_s5, %s463_s28 }
   0xe   : > { %494 = vmatprep.subr.bf16.mxu0 %v548_v1  ;;  %516 = vmatprep.mubr.msk.bf16.mxu1 %vm549_vm0, %v548_v1  ;;  %v221_v5 = vld [vmem:[%s215_s6] sm:$0xff] }
   0xf   : > { %501 = vmatpush3.bf16.msra.mxu1 %v532_v3  ;;  %v222_v7 = vpack.c.bf16 %v221_v5, %v221_v5  ;;  %v539_v12 = vld [vmem:[%s643_s3] sm:$0xff]  }
  0x10   : > { %502 = vmatprep.subr.bf16.mxu1 %v548_v1  ;;  %v465_v13 = vld [vmem:[%s642_s2] ss:$0 sm:$0xff] }
  0x11   : > { %495 = vmatpush3.bf16.msra.mxu0 %v531_v2  ;;  %v469_v21 = vld [vmem:[%s644_s4] ss:$0 sm:$0xff] }
  0x13   : > { %503 = vmatpush3.bf16.msra.mxu1 %v533_v4 }
  0x14   : > { %504 = vmatprep.subr.bf16.mxu1 %v548_v1  ;;  %497 = vmatmul.mubr.msk.bf16.vlgmr.msra.gmra.mxu0 %vm246_vm1, %v222_v7 }
  0x17   : > { %505 = vmatpush3.bf16.msra.mxu1 %v534_v6 }
  0x18   : > { %506 = vmatprep.subr.bf16.mxu1 %v548_v1 }
  0x1b   : > { %507 = vmatpush3.bf16.msra.mxu1 %v535_v8 }
  0x1c   : > { %508 = vmatprep.subr.bf16.mxu1 %v548_v1 }
  0x1f   : > { %509 = vmatpush3.bf16.msra.mxu1 %v536_v9 }
  0x20   : > { %510 = vmatprep.subr.bf16.mxu1 %v548_v1 }
  0x23   : > { %511 = vmatpush3.bf16.msra.mxu1 %v537_v10 }
  0x24   : > { %512 = vmatprep.subr.bf16.mxu1 %v548_v1 }
  0x27   : > { %513 = vmatpush3.bf16.msra.mxu1 %v538_v11 }
  0x28   : > { %514 = vmatprep.subr.bf16.mxu1 %v548_v1 }
  0x2b   : > { %515 = vmatpush3.bf16.msra.mxu1 %v539_v12 }
  0xd4   : > { %v284_v14 = vpop.f32.mrf.mxu0 }
  0xd5   : > { %v285_v15 = vadd.f32 %v465_v13, %v284_v14 }
  0xd6   : > { %v498_v16 = vpop.f32.mrf.mxu0 }
  0xd7   : > { %v290_v17 = vmax.f32 %v285_v15, 0.0 }
  0xd8   : > { %v287_v18 = vpop.f32.mrf.mxu0 }
  0xd9   : > { %v291_v19 = vpack.c.bf16 %v290_v17, %v290_v17 }
  0xda   : > { %v499_v20 = vpop.f32.mrf.mxu0 }
  0xdb   : > { %517 = vmatmul.mubr.bf16.vlgmr.msra.gmra.mxu1 %v291_v19 }
 0x19b   : > { %v397_v22 = vpop.f32.mrf.mxu1 }
 0x19c   : > { %v398_v23 = vadd.f32 %v469_v21, %v397_v22 }
 0x19d   : > { %v518_v24 = vpop.f32.mrf.mxu1 }
 0x19e   : > { %404 = vst.msk [vmem:[%s219_s27] sm:$0xff] %vm403_vm2, %v398_v23 }
 0x19f   : > { %v400_v25 = vpop.f32.mrf.mxu1 }
 0x1a1   : > { %v519_v26 = vpop.f32.mrf.mxu1 }
 0x1a2 PF: > { %s15_s18 = sadd.s32 1, %s546_s18  }
 0x1a3   : > { %p12_p4 = scmp.ge.s32.totalorder %s15_s18, 4  }
 0x1a5   :  { %14 = sbr.rel (!%p12_p4) target bundleno = 1 (0x1), region = 70 }

</bundles_post_ra>
